<compile_context>
chip_gen: v7x
topology: tpu7x:2x2x1
jax: 0.10.0
libtpu: 0.0.40
codegen_flags: <defaults>
</compile_context>

<pallas_src>
import numpy as np

import jax
import jax.numpy as jnp
from jax import lax
from jax.experimental import pallas as pl
from jax.experimental.pallas import tpu as pltpu

JT_PAIRS = [
    (1, 6, 7), (6, 7, 8), (2, 9, 10), (9, 10, 11), (3, 12, 13),
    (12, 13, 14), (4, 15, 16), (15, 16, 17), (5, 18, 19), (18, 19, 20),
]
LIMITS = [
    (1.1015068084554505, 2.070916296316571),
    (0.9540785153259138, 1.691808251623448),
    (1.1312027460360037, 2.329081950030679),
    (0.815033812539987, 2.060817143842138),
    (1.2533508990599322, 2.3022093634117544),
    (0.9554527746615382, 2.155504840166255),
    (1.2184758818848063, 2.368225582698927),
    (0.8942728756836146, 1.8789159830044737),
    (1.2400410812768863, 2.4079241069645163),
    (0.7221938172993532, 1.8734145809977467),
]

_N_PAIRS = len(JT_PAIRS)
_A_IDX = np.array([a for a, _, _ in JT_PAIRS], dtype=np.int32)
_B_IDX = np.array([b for _, b, _ in JT_PAIRS], dtype=np.int32)
_C_IDX = np.array([c for _, _, c in JT_PAIRS], dtype=np.int32)


def _ratio_loss_kernel(x_ref, mn_ref, mx_ref, out_ref):
    # x_ref : (6*_N_PAIRS, B) f32 VMEM, rows = [a_u; a_v; b_u; b_v; c_u; c_v]
    #         (10 rows each), batch on the lane axis.
    # mn_ref/mx_ref : (10, 1) f32 VMEM per-pair ratio limits.
    # out_ref: (1, 1) f32 SMEM scalar loss.
    n = _N_PAIRS
    a_u = x_ref[0 * n:1 * n, :]
    a_v = x_ref[1 * n:2 * n, :]
    b_u = x_ref[2 * n:3 * n, :]
    b_v = x_ref[3 * n:4 * n, :]
    c_u = x_ref[4 * n:5 * n, :]
    c_v = x_ref[5 * n:6 * n, :]

    du12 = b_u - a_u
    dv12 = b_v - a_v
    du23 = c_u - b_u
    dv23 = c_v - b_v
    s12 = du12 * du12 + dv12 * dv12            # (10, B) squared bone lengths
    s23 = du23 * du23 + dv23 * dv23

    # One sqrt + one EUP rsqrt instead of two sqrts and a divide.
    # TODO(synk): parity with PyTorch — no epsilon, r is inf/NaN if joints b,c coincide.
    r = jnp.sqrt(s12) * lax.rsqrt(s23)         # (10, B)

    mn = mn_ref[...]                           # (10, 1), broadcasts over lanes
    mx = mx_ref[...]

    # Branchless hinge (regions disjoint; identical to the nested where except it
    # returns 0 instead of a negative value at the measure-zero r == mx boundary).
    pen = jnp.maximum(jnp.maximum(mn - r, r - mx), 0.0)

    # Single reduction; 1/(10*B) is a trace-time scalar constant (mean of
    # per-pair means over equal-sized groups == global mean).
    inv_count = jnp.float32(1.0 / (pen.shape[0] * pen.shape[1]))
    out_ref[0, 0] = jnp.sum(pen) * inv_count


def ratio_loss(jt_uvd_pred, jt_uvd_gt=None):
    # jt_uvd_gt is unused in the original forward(); kept for API parity.
    del jt_uvd_gt
    x = jt_uvd_pred.astype(jnp.float32)

    # Wrapper-side static-index gather + re-layout (cheap XLA plumbing):
    # build a lane-dense (60, B) slab [a_u; a_v; b_u; b_v; c_u; c_v].
    x2d = jnp.concatenate(
        [
            x[:, _A_IDX, 0], x[:, _A_IDX, 1],
            x[:, _B_IDX, 0], x[:, _B_IDX, 1],
            x[:, _C_IDX, 0], x[:, _C_IDX, 1],
        ],
        axis=1,
    ).T                                                       # (6*10, B)

    mn = jnp.array([m for m, _ in LIMITS], dtype=jnp.float32).reshape(_N_PAIRS, 1)
    mx = jnp.array([m for _, m in LIMITS], dtype=jnp.float32).reshape(_N_PAIRS, 1)

    # Note: for very large B add a 1-D "parallel" grid over the lane axis with
    # per-block partial sums; at these sizes a single block is right.
    out = pl.pallas_call(
        _ratio_loss_kernel,
        out_shape=jax.ShapeDtypeStruct((1, 1), jnp.float32),
        in_specs=[
            pl.BlockSpec(memory_space=pltpu.MemorySpace.VMEM),
            pl.BlockSpec(memory_space=pltpu.MemorySpace.VMEM),
            pl.BlockSpec(memory_space=pltpu.MemorySpace.VMEM),
        ],
        out_specs=pl.BlockSpec(memory_space=pltpu.MemorySpace.SMEM),
    )(x2d, mn, mx)
    return out[0, 0]


def _ratio_loss_ref(jt_uvd_pred):
    # Pure-JAX reference mirroring the PyTorch module exactly.
    losses = []
    for (a, b, c), (mn, mx) in zip(JT_PAIRS, LIMITS):
        p1 = jt_uvd_pred[:, a, :2]
        p2 = jt_uvd_pred[:, b, :2]
        p3 = jt_uvd_pred[:, c, :2]
        l12 = jnp.linalg.norm(p2 - p1, axis=1)
        l23 = jnp.linalg.norm(p3 - p2, axis=1)
        r = l12 / l23
        pen = jnp.where((r > mn) & (r < mx), jnp.zeros_like(r),
                        jnp.where(r > mx, r - mx, mn - r))
        losses.append(jnp.mean(pen))
    return jnp.mean(jnp.stack(losses))


if __name__ == "__main__":
    B, J, D = 8, 21, 3
    key = jax.random.PRNGKey(0)
    k1, k2 = jax.random.split(key)
    jt_uvd_pred = jax.random.normal(k1, (B, J, D), dtype=jnp.float32)
    jt_uvd_gt = jax.random.normal(k2, (B, J, D), dtype=jnp.float32)  # unused

    out = ratio_loss(jt_uvd_pred, jt_uvd_gt)
    out = jax.block_until_ready(out)

    ref = jax.block_until_ready(_ratio_loss_ref(jt_uvd_pred))
    assert jnp.allclose(out, ref, atol=1e-5, rtol=1e-5), (out, ref)

    print("KERNEL_OK")
</pallas_src>

<mosaic_0001>
module attributes {stable_mosaic.version = 11 : i64} {
  func.func @_ratio_loss_kernel(%arg0: memref<60x8xf32, #tpu.memory_space<vmem>>, %arg1: memref<10x1xf32, #tpu.memory_space<vmem>>, %arg2: memref<10x1xf32, #tpu.memory_space<vmem>>, %arg3: memref<1x1xf32, #tpu.memory_space<smem>>) attributes {dimension_semantics = [], scalar_prefetch = 0 : i64, scratch_operands = 0 : i64, tpu.core_type = #tpu.core_type<tc>} {
    %c0 = arith.constant 0 : index
    %c0_0 = arith.constant 0 : index
    %0 = vector.load %arg0[%c0, %c0_0] : memref<60x8xf32, #tpu.memory_space<vmem>>, vector<10x8xf32>
    %c10 = arith.constant 10 : index
    %c0_1 = arith.constant 0 : index
    %1 = vector.load %arg0[%c10, %c0_1] : memref<60x8xf32, #tpu.memory_space<vmem>>, vector<10x8xf32>
    %c20 = arith.constant 20 : index
    %c0_2 = arith.constant 0 : index
    %2 = vector.load %arg0[%c20, %c0_2] : memref<60x8xf32, #tpu.memory_space<vmem>>, vector<10x8xf32>
    %c30 = arith.constant 30 : index
    %c0_3 = arith.constant 0 : index
    %3 = vector.load %arg0[%c30, %c0_3] : memref<60x8xf32, #tpu.memory_space<vmem>>, vector<10x8xf32>
    %c40 = arith.constant 40 : index
    %c0_4 = arith.constant 0 : index
    %4 = vector.load %arg0[%c40, %c0_4] : memref<60x8xf32, #tpu.memory_space<vmem>>, vector<10x8xf32>
    %c50 = arith.constant 50 : index
    %c0_5 = arith.constant 0 : index
    %5 = vector.load %arg0[%c50, %c0_5] : memref<60x8xf32, #tpu.memory_space<vmem>>, vector<10x8xf32>
    %6 = arith.subf %2, %0 : vector<10x8xf32>
    %7 = arith.subf %3, %1 : vector<10x8xf32>
    %8 = arith.subf %4, %2 : vector<10x8xf32>
    %9 = arith.subf %5, %3 : vector<10x8xf32>
    %10 = arith.mulf %6, %6 : vector<10x8xf32>
    %11 = arith.mulf %7, %7 : vector<10x8xf32>
    %12 = arith.addf %10, %11 : vector<10x8xf32>
    %13 = arith.mulf %8, %8 : vector<10x8xf32>
    %14 = arith.mulf %9, %9 : vector<10x8xf32>
    %15 = arith.addf %13, %14 : vector<10x8xf32>
    %16 = math.sqrt %12 : vector<10x8xf32>
    %17 = math.rsqrt %15 : vector<10x8xf32>
    %18 = arith.mulf %16, %17 : vector<10x8xf32>
    %c0_6 = arith.constant 0 : index
    %c0_7 = arith.constant 0 : index
    %19 = vector.load %arg1[%c0_6, %c0_7] : memref<10x1xf32, #tpu.memory_space<vmem>>, vector<10x1xf32>
    %c0_8 = arith.constant 0 : index
    %c0_9 = arith.constant 0 : index
    %20 = vector.load %arg2[%c0_8, %c0_9] : memref<10x1xf32, #tpu.memory_space<vmem>>, vector<10x1xf32>
    %21 = vector.broadcast %19 : vector<10x1xf32> to vector<10x8xf32>
    %22 = arith.subf %21, %18 : vector<10x8xf32>
    %23 = vector.broadcast %20 : vector<10x1xf32> to vector<10x8xf32>
    %24 = arith.subf %18, %23 : vector<10x8xf32>
    %25 = arith.maximumf %22, %24 : vector<10x8xf32>
    %cst = arith.constant 0.000000e+00 : f32
    %26 = vector.broadcast %cst : f32 to vector<10x8xf32>
    %27 = arith.maximumf %25, %26 : vector<10x8xf32>
    %28 = vector.shape_cast %27 : vector<10x8xf32> to vector<1x10x8xf32>
    %cst_10 = arith.constant dense<0.000000e+00> : vector<1xf32>
    %29 = vector.multi_reduction <add>, %28, %cst_10 [1, 2] : vector<1x10x8xf32> to vector<1xf32>
    %30 = vector.shape_cast %29 : vector<1xf32> to vector<1x1x1xf32>
    %31 = vector.extract %30[0, 0, 0] : f32 from vector<1x1x1xf32>
    %cst_11 = arith.constant 1.250000e-02 : f32
    %32 = arith.mulf %31, %cst_11 : f32
    %c0_12 = arith.constant 0 : index
    %c0_13 = arith.constant 0 : index
    %33 = memref.load %arg3[%c0_12, %c0_13] : memref<1x1xf32, #tpu.memory_space<smem>>
    memref.store %32, %arg3[%c0_12, %c0_13] : memref<1x1xf32, #tpu.memory_space<smem>>
    return
  }
}

</mosaic_0001>

<bundles_post_ra>
// kernel: tpu_custom_call.1
= control target key start
LH: loop header
LB: loop body
LE: loop exit
PB: predicated region body
PF: predicated region fallthrough
CT: control target
= control target key end

     0   :  { %v153_v2 = vmov 0   ;;  %s235_s0 = inlined_call_operand.vmem [shape: f32[60,8], index: 0, kind: input, shape index: {}]   ;;  %s236_s1 = inlined_call_operand.vmem [shape: f32[10,1], index: 1, kind: input, shape index: {}]   ;;  %s237_s2 = inlined_call_operand.vmem [shape: f32[10,1], index: 2, kind: input, shape index: {}]   ;;  %s238_s3 = inlined_call_operand.hbm [shape: f32[1,1], index: 3, kind: output, shape index: {}]  }
   0x1   :  { %v67_v0 = vld [vmem:[%s237_s2] sm:$0xff]  ;;  %132 = vset.pattern.permute.xlu1 %v153_v2  ;;  %131 = vset.pattern.permute.xlu0 %v153_v2  ;;  %v68_v3 = vld [vmem:[%s237_s2 + $0x8] sm:$0x3] }
   0x2   :  { %v65_v1 = vld [vmem:[%s236_s1] sm:$0xff]  ;;  %83 = vperm.xlu1 %132, %v67_v0   ;;  %v66_v4 = vld [vmem:[%s236_s1 + $0x8] sm:$0x3] }
   0x3   :  { %71 = vperm.xlu0 %131, %v65_v1  }
   0x4   :  { %8 = vsyncpa [#allocation3], 0  ;;  %v15_v5 = vld [vmem:[%s235_s0] sm:$0xff]  ;;  %v17_v6 = vld [vmem:[%s235_s0 + $0xa] sm:$0xff]  ;;  %vm97_vm4 = vcmask 64512   ;;  %vm99_vm5 = vcmask 58368  }
   0x5   :  { %v19_v7 = vld [vmem:[%s235_s0 + $0x14] sm:$0xff]  ;;  %v21_v8 = vld [vmem:[%s235_s0 + $0x1e] sm:$0xff]  ;;  %v16_v11 = vld [vmem:[%s235_s0 + $0x8] sm:$0x3]  ;;  %s141_s18 = scalar_lea.hbm %s238_s3, 16 }
   0x6   :  { %88 = vperm.xlu1 %132, %v68_v3   ;;  %v27_v9 = vsub.f32 %v19_v7, %v15_v5  ;;  %v29_v10 = vsub.f32 %v21_v8, %v17_v6  ;;  %v18_v12 = vld [vmem:[%s235_s0 + $0x12] sm:$0x3]  ;;  %v20_v13 = vld [vmem:[%s235_s0 + $0x1c] sm:$0x3]  ;;  %v22_v14 = vld [vmem:[%s235_s0 + $0x26] sm:$0x3]  ;;  %p142_p0 = scmp.ne.s32.totalorder %s238_s3, %s141_s18  ;;  %p145_p1 = scmp.lt.u32.totalorder %s141_s18, %s238_s3 }
   0x7   :  { %76 = vperm.xlu0 %131, %v66_v4   ;;  %v28_v17 = vsub.f32 %v20_v13, %v16_v11  ;;  %v30_v18 = vsub.f32 %v22_v14, %v18_v12  ;;  %v23_v19 = vld [vmem:[%s235_s0 + $0x28] sm:$0xff]  ;;  %v25_v20 = vld [vmem:[%s235_s0 + $0x32] sm:$0xff]  ;;  %v24_v26 = vld [vmem:[%s235_s0 + $0x30] sm:$0x3] }
   0x8   :  { %v35_v15 = vmul.f32 %v27_v9, %v27_v9  ;;  %v37_v16 = vmul.f32 %v29_v10, %v29_v10  ;;  %v31_v24 = vsub.f32 %v23_v19, %v19_v7  ;;  %v33_v25 = vsub.f32 %v25_v20, %v21_v8  ;;  %v26_v27 = vld [vmem:[%s235_s0 + $0x3a] sm:$0x3]  ;;  %p147_p2 = pnand %p145_p1, %p142_p0 }
   0x9   :  { %v36_v22 = vmul.f32 %v28_v17, %v28_v17  ;;  %v38_v23 = vmul.f32 %v30_v18, %v30_v18  ;;  %v32_v31 = vsub.f32 %v24_v26, %v20_v13  ;;  %v34_v32 = vsub.f32 %v26_v27, %v22_v14 }
   0xa   :  { %v39_v21 = vadd.f32 %v37_v16, %v35_v15  ;;  %v41_v29 = vmul.f32 %v31_v24, %v31_v24  ;;  %v43_v30 = vmul.f32 %v33_v25, %v33_v25 }
   0xb   :  { %v40_v28 = vadd.f32 %v38_v23, %v36_v22  ;;  %v42_v34 = vmul.f32 %v32_v31, %v32_v31  ;;  %v44_v35 = vmul.f32 %v34_v32, %v34_v32 }
   0xc   :  { %133 = vrsqrt.f32 %v39_v21  ;;  %v45_v33 = vadd.f32 %v43_v30, %v41_v29  ;;  %vm49_vm0 = vcmp.eq.f32.partialorder %v39_v21, inf  ;;  %v52_v40 = vand.u32 2147483648, %v39_v21 }
   0xd   :  { %135 = vrsqrt.f32 %v40_v28  ;;  %v46_v37 = vadd.f32 %v44_v35, %v42_v34  ;;  %vm51_vm1 = vcmp.eq.f32.partialorder %v39_v21, 0.0  ;;  %vm56_vm2 = vcmp.eq.f32.partialorder %v40_v28, inf }
   0xe   :  { %137 = vrsqrt.f32 %v45_v33  ;;  %v59_v45 = vand.u32 2147483648, %v40_v28  ;;  %vm58_vm3 = vcmp.eq.f32.partialorder %v40_v28, 0.0 }
   0xf   :  { %139 = vrsqrt.f32 %v46_v37 }
  0x16   :  { %v134_v36 = vpop.eup %133 }
  0x17   :  { %v48_v38 = vmul.f32 %v134_v36, %v39_v21  ;;  %v136_v39 = vpop.eup %135 }
  0x18   :  { %v55_v42 = vmul.f32 %v136_v39, %v40_v28  ;;  %v138_v43 = vpop.eup %137 }
  0x19   :  { %v50_v41 = vsel %vm49_vm0, %v39_v21, %v48_v38  ;;  %v140_v48 = vpop.eup %139 }
  0x1a   :  { %v53_v44 = vsel %vm51_vm1, %v52_v40, %v50_v41  ;;  %v57_v46 = vsel %vm56_vm2, %v40_v28, %v55_v42 }
  0x1b   :  { %v63_v47 = vmul.f32 %v138_v43, %v53_v44  ;;  %v60_v49 = vsel %vm58_vm3, %v59_v45, %v57_v46 }
  0x1c   :  { %v64_v54 = vmul.f32 %v140_v48, %v60_v49 }
  0x81   :  { %v84_v50 = vpop.permute.xlu1 %83 }
  0x82   :  { %v72_v51 = vpop.permute.xlu0 %71  ;;  %v91_v52 = vsub.f32 %v63_v47, %v84_v50 }
  0x83   :  { %v79_v53 = vsub.f32 %v72_v51, %v63_v47 }
  0x85   :  { %v93_v55 = vmax.f32 %v79_v53, %v91_v52  ;;  %v89_v56 = vpop.permute.xlu1 %88 }
  0x86   :  { %v77_v57 = vpop.permute.xlu0 %76  ;;  %v92_v58 = vsub.f32 %v64_v54, %v89_v56 }
  0x87   :  { %v80_v59 = vsub.f32 %v77_v57, %v64_v54  ;;  %v95_v60 = vmax.f32 %v93_v55, 0.0 }
  0x89   :  { %v94_v61 = vmax.f32 %v80_v59, %v92_v58  ;;  %v98_v63 = vsel %vm97_vm4, %v95_v60, 0.0 }
  0x8b   :  { %v96_v62 = vmax.f32 %v94_v61, 0.0 }
  0x8d   :  { %v100_v0 = vsel %vm99_vm5, %v96_v62, 0.0 }
  0x8e   :  { %v101_v1 = vadd.f32 %v100_v0, %v98_v63 }
  0x90   :  { %102 = vadd.xlane.f32.xlu0 %v101_v1 }
 0x11d   :  { %v103_v2 = vpop.xlane.xlu0 %102 }
 0x11e   :  { %v104_v3 = vrot.slane %v103_v2, 4 }
 0x120   :  { %v105_v4 = vadd.f32 %v104_v3, %v103_v2 }
 0x122   :  { %v106_v5 = vrot.slane %v105_v4, 2 }
 0x124   :  { %v107_v6 = vadd.f32 %v106_v5, %v105_v4 }
 0x126   :  { %v108_v7 = vrot.slane %v107_v6, 1 }
 0x128   :  { %v109_v8 = vadd.f32 %v108_v7, %v107_v6 }
 0x12a   :  { %127 = vpush %v109_v8 }
 0x15b   :  { %s128_s0 = spop %127 }
 0x15c   :  { %s111_s15 = smul.f32 0.0125, %s128_s0 }
 0x15e   :  { %113 = sst [smem:[#allocation2]] %s111_s15 }
 0x15f   :  { %150 = shalt.err (!%p147_p2)
}
 0x160   :  { %s154_s23 = smov [#allocation2]  }
 0x161   :  { %121 = dma.smem_to_hbm %s154_s23, 16, %s238_s3, [#allocation3]  }
 0x162   :  { %151 = dma.done.wait [#allocation3], 16  }
 0x163   :  { %152 = vsyncadd [#allocation3], 4294967280 }
 0x164   :  { %125 = sfence }
 0x165   :  { %126 = vsyncpa [#allocation3], 1 }

</bundles_post_ra>
